<compile_context>
chip_gen: v7x
topology: tpu7x:2x2x1
jax: 0.10.0
libtpu: 0.0.40
codegen_flags: <defaults>
</compile_context>

<pallas_src>
import functools

import jax
import jax.numpy as jnp
from jax.experimental import pallas as pl
from jax.experimental.pallas import tpu as pltpu


def svm_kernel(w_ref, b_ref, x_ref, o_ref):
    # w_ref: (2,) f32 in SMEM, b_ref: (1,) f32 in SMEM
    # x_ref: (2, TR, TC) f32 in VMEM  (feature-major; batch tiled as (TR, TC))
    # o_ref: (TR, TC) in VMEM         (sublane- and lane-dense output tile)
    w0 = w_ref[0]
    w1 = w_ref[1]
    b = b_ref[0]
    x0 = x_ref[0]                      # (TR, TC) full dense tile
    x1 = x_ref[1]                      # (TR, TC) full dense tile
    o_ref[...] = (w0 * x0 + w1 * x1 + b).astype(o_ref.dtype)


@functools.partial(jax.jit, static_argnames=("tile_r", "lane_c"))
def svm_forward(x, weight, bias, *, tile_r=512, lane_c=512):
    """y = x @ W^T + b for x:(N,2), weight:(1,2), bias:(1,) -> (N,1)."""
    n, in_f = x.shape
    assert in_f == 2
    assert tile_r % 8 == 0 and lane_c % 128 == 0

    # Batch axis -> dense (rows, lanes) slab.  Shrink the row tile for tiny N.
    r_total = pl.cdiv(n, lane_c)
    tile_r_eff = min(tile_r, max(8, ((r_total + 7) // 8) * 8))
    r_pad = pl.cdiv(r_total, tile_r_eff) * tile_r_eff
    n_pad = r_pad * lane_c
    n_blocks = r_pad // tile_r_eff

    # Layout plumbing (fuses into one copy under jit): zero-pad the batch,
    # make the feature axis leading, and tile the batch as (R_pad, lane_c).
    x_pad = jnp.pad(x.astype(jnp.float32), ((0, n_pad - n), (0, 0)))  # (N_pad, 2)
    x3 = x_pad.T.reshape(2, r_pad, lane_c)                            # (2, R_pad, C)

    w1d = weight.reshape(2).astype(jnp.float32)   # 1-D SMEM scalars
    b1d = bias.reshape(1).astype(jnp.float32)

    out = pl.pallas_call(
        svm_kernel,
        out_shape=jax.ShapeDtypeStruct((r_pad, lane_c), x.dtype),
        grid=(n_blocks,),
        in_specs=[
            pl.BlockSpec(memory_space=pltpu.MemorySpace.SMEM),            # weight (2,)
            pl.BlockSpec(memory_space=pltpu.MemorySpace.SMEM),            # bias   (1,)
            pl.BlockSpec((2, tile_r_eff, lane_c), lambda i: (0, i, 0)),   # x tile
        ],
        out_specs=pl.BlockSpec((tile_r_eff, lane_c), lambda i: (i, 0)),   # dense out
        compiler_params=pltpu.CompilerParams(
            dimension_semantics=("parallel",),
            vmem_limit_bytes=32 * 1024 * 1024,
        ),
    )(w1d, b1d, x3)

    # Un-pad and restore PyTorch's (N, 1) output shape (fused under jit).
    return out.reshape(n_pad)[:n].reshape(n, 1)


if __name__ == "__main__":
    key = jax.random.PRNGKey(0)
    kx, kw, kb, kx2, kx3 = jax.random.split(key, 5)

    # Deterministic parameter init mimicking nn.Linear(2, 1):
    # uniform(-1/sqrt(in_features), 1/sqrt(in_features)).
    bound = 1.0 / jnp.sqrt(2.0)
    weight = jax.random.uniform(kw, (1, 2), minval=-bound, maxval=bound, dtype=jnp.float32)
    bias = jax.random.uniform(kb, (1,), minval=-bound, maxval=bound, dtype=jnp.float32)

    # Small batch of 2-D points (SVM input).
    N = 8
    x = jax.random.normal(kx, (N, 2), dtype=jnp.float32)
    out = jax.block_until_ready(svm_forward(x, weight, bias))
    ref = x @ weight.T + bias
    assert out.shape == (N, 1)
    assert jnp.allclose(out, ref, atol=1e-5), (out, ref)

    # Non-multiple batch exercising the padding path at default tiles.
    N2 = 1000
    x2 = jax.random.normal(kx2, (N2, 2), dtype=jnp.float32)
    out2 = jax.block_until_ready(svm_forward(x2, weight, bias))
    ref2 = x2 @ weight.T + bias
    assert out2.shape == (N2, 1)
    assert jnp.allclose(out2, ref2, atol=1e-5)

    # Multi-block grid + ragged tail with small tiles (exercises the pipeline).
    N3 = 5000
    x3 = jax.random.normal(kx3, (N3, 2), dtype=jnp.float32)
    out3 = jax.block_until_ready(svm_forward(x3, weight, bias, tile_r=8, lane_c=128))
    ref3 = x3 @ weight.T + bias
    assert out3.shape == (N3, 1)
    assert jnp.allclose(out3, ref3, atol=1e-5)

    print("KERNEL_OK")
</pallas_src>

<mosaic_0001>
module attributes {stable_mosaic.version = 11 : i64} {
  func.func @svm_kernel(%arg0: i32, %arg1: memref<2xf32, #tpu.memory_space<smem>>, %arg2: memref<1xf32, #tpu.memory_space<smem>>, %arg3: memref<2x8x512xf32, #tpu.memory_space<vmem>>, %arg4: memref<8x512xf32, #tpu.memory_space<vmem>>) attributes {dimension_semantics = [#tpu.dimension_semantics<parallel>], iteration_bounds = array<i64: 1>, scalar_prefetch = 0 : i64, scratch_operands = 0 : i64, tpu.core_type = #tpu.core_type<tc>, window_params = [{transform_indices = @transform_0, window_bounds = array<i64: 2>}, {transform_indices = @transform_1, window_bounds = array<i64: 1>}, {transform_indices = @transform_2, window_bounds = array<i64: 2, 8, 512>}, {transform_indices = @transform_3, window_bounds = array<i64: 8, 512>}]} {
    %c0 = arith.constant 0 : index
    %0 = memref.load %arg1[%c0] : memref<2xf32, #tpu.memory_space<smem>>
    %c1 = arith.constant 1 : index
    %1 = memref.load %arg1[%c1] : memref<2xf32, #tpu.memory_space<smem>>
    %c0_0 = arith.constant 0 : index
    %2 = memref.load %arg2[%c0_0] : memref<1xf32, #tpu.memory_space<smem>>
    %c0_1 = arith.constant 0 : index
    %c0_2 = arith.constant 0 : index
    %c0_3 = arith.constant 0 : index
    %3 = vector.load %arg3[%c0_1, %c0_2, %c0_3] : memref<2x8x512xf32, #tpu.memory_space<vmem>>, vector<1x8x512xf32>
    %4 = vector.shape_cast %3 : vector<1x8x512xf32> to vector<8x512xf32>
    %c1_4 = arith.constant 1 : index
    %c0_5 = arith.constant 0 : index
    %c0_6 = arith.constant 0 : index
    %5 = vector.load %arg3[%c1_4, %c0_5, %c0_6] : memref<2x8x512xf32, #tpu.memory_space<vmem>>, vector<1x8x512xf32>
    %6 = vector.shape_cast %5 : vector<1x8x512xf32> to vector<8x512xf32>
    %7 = vector.broadcast %0 : f32 to vector<8x512xf32>
    %8 = arith.mulf %7, %4 : vector<8x512xf32>
    %9 = vector.broadcast %1 : f32 to vector<8x512xf32>
    %10 = arith.mulf %9, %6 : vector<8x512xf32>
    %11 = arith.addf %8, %10 : vector<8x512xf32>
    %12 = vector.broadcast %2 : f32 to vector<8x512xf32>
    %13 = arith.addf %11, %12 : vector<8x512xf32>
    %c0_7 = arith.constant 0 : index
    %c0_8 = arith.constant 0 : index
    %14 = vector.load %arg4[%c0_7, %c0_8] : memref<8x512xf32, #tpu.memory_space<vmem>>, vector<8x512xf32>
    tpu.vector_store %arg4[%c0_7, %c0_8], %13 {strides = array<i32>} : memref<8x512xf32, #tpu.memory_space<vmem>>, vector<8x512xf32>,
    return
  }
  func.func @transform_0(%arg0: i32) -> i32 {
    %c0_i32 = arith.constant 0 : i32
    %c0_i32_0 = arith.constant 0 : i32
    return %c0_i32 : i32
  }
  func.func @transform_1(%arg0: i32) -> i32 {
    %c0_i32 = arith.constant 0 : i32
    %c0_i32_0 = arith.constant 0 : i32
    return %c0_i32 : i32
  }
  func.func @transform_2(%arg0: i32) -> (i32, i32, i32) {
    %c0_i32 = arith.constant 0 : i32
    %c0_i32_0 = arith.constant 0 : i32
    %c0_i32_1 = arith.constant 0 : i32
    return %c0_i32, %arg0, %c0_i32_0 : i32, i32, i32
  }
  func.func @transform_3(%arg0: i32) -> (i32, i32) {
    %c0_i32 = arith.constant 0 : i32
    %c0_i32_0 = arith.constant 0 : i32
    return %arg0, %c0_i32 : i32, i32
  }
}

</mosaic_0001>

<bundles_post_ra>
// kernel: svm_forward.1
= control target key start
LH: loop header
LB: loop body
LE: loop exit
PB: predicated region body
PF: predicated region fallthrough
CT: control target
= control target key end

     0   :  { %9 = vsyncpa [#allocation4], 0  ;;  %s151_s0 = inlined_call_operand.vmem [shape: f32[2], index: 0, kind: input, shape index: {}]   ;;  %s152_s1 = inlined_call_operand.<no memory space> [shape: f32[1], index: 1, kind: input, shape index: {}]   ;;  %s153_s2 = inlined_call_operand.vmem [shape: f32[2,8,512], index: 2, kind: input, shape index: {}]   ;;  %s154_s3 = inlined_call_operand.vmem [shape: f32[8,512], index: 3, kind: output, shape index: {}]  }
   0x1   :  { %s16_s14 = sshll.u32 %s151_s0, 4  ;;  %s17_s14 = int_to_ptr.vmem [resolvable:$true] %s16_s14 }
   0x2   :  { %s74_s15 = scalar_lea.vmem %s17_s14, 16  ;;  %p79_p1 = scmp.lt.s32.totalorder %s17_s14, %s17_s14 }
   0x3   :  { %p75_p0 = scmp.ne.s32.totalorder %s17_s14, %s74_s15  ;;  %p80_p2 = scmp.lt.s32.totalorder %s74_s15, %s74_s15 }
   0x5   :  { %p81_p3 = por %p80_p2, %p79_p1 }
   0x7   :  { %p82_p4 = pnand %p81_p3, %p75_p0 }
   0x9   :  { %85 = shalt.err (!%p82_p4)
}
   0xa   :  { %s88_s16 = smov [#allocation3]  }
   0xb   :  { %19 = dma.vmem_to_smem %s17_s14, 16, %s88_s16, [#allocation4]  }
   0xc   :  { %86 = dma.done.wait [#allocation4], 16  }
   0xd   :  { %87 = vsyncadd [#allocation4], 4294967280 }
   0xe   :  { %27 = sfence }
   0xf   :  { %s28_s17 = sld [smem:[#allocation3]]  ;;  %s68_s18 = sld [smem:[#allocation3 + $0x1]]  ;;  %v31_v0 = vld [vmem:[%s153_s2] sm:$0xff]  ;;  %v32_v2 = vld [vmem:[%s153_s2 + $0x8] sm:$0xff]  ;;  %v33_v4 = vld [vmem:[%s153_s2 + $0x10] sm:$0xff]  ;;  %v54_v10 = vstv %s152_s1 }
  0x10   :  { %v69_v1 = vld [vmem:[%s153_s2 + $0x20] sm:$0xff]  ;;  %v70_v3 = vld [vmem:[%s153_s2 + $0x28] sm:$0xff]  ;;  %v71_v5 = vld [vmem:[%s153_s2 + $0x30] sm:$0xff] }
  0x11   :  { %v34_v6 = vld [vmem:[%s153_s2 + $0x18] sm:$0xff] }
  0x12   :  { %v72_v7 = vld [vmem:[%s153_s2 + $0x38] sm:$0xff] }
  0x15   :  { %v40_v8 = vstv %s28_s17  ;;  %v45_v9 = vstv %s68_s18 }
  0x16   :  { %v41_v11 = vmul.f32 %v40_v8, %v31_v0  ;;  %v46_v12 = vmul.f32 %v69_v1, %v45_v9  ;;  %v42_v13 = vmul.f32 %v40_v8, %v32_v2  ;;  %v47_v14 = vmul.f32 %v70_v3, %v45_v9 }
  0x17   :  { %v43_v15 = vmul.f32 %v40_v8, %v33_v4  ;;  %v48_v16 = vmul.f32 %v71_v5, %v45_v9  ;;  %v44_v17 = vmul.f32 %v40_v8, %v34_v6  ;;  %v49_v18 = vmul.f32 %v72_v7, %v45_v9 }
  0x18   :  { %v50_v19 = vadd.f32 %v46_v12, %v41_v11  ;;  %v51_v20 = vadd.f32 %v47_v14, %v42_v13 }
  0x19   :  { %v52_v21 = vadd.f32 %v48_v16, %v43_v15  ;;  %v53_v22 = vadd.f32 %v49_v18, %v44_v17 }
  0x1a   :  { %v55_v23 = vadd.f32 %v54_v10, %v50_v19  ;;  %v56_v24 = vadd.f32 %v54_v10, %v51_v20 }
  0x1b   :  { %v57_v25 = vadd.f32 %v54_v10, %v52_v21  ;;  %v58_v26 = vadd.f32 %v54_v10, %v53_v22 }
  0x1c   :  { %59 = vst [vmem:[%s154_s3] sm:$0xff] %v55_v23  ;;  %60 = vst [vmem:[%s154_s3 + $0x8] sm:$0xff] %v56_v24 }
  0x1d   :  { %61 = vst [vmem:[%s154_s3 + $0x10] sm:$0xff] %v57_v25  ;;  %62 = vst [vmem:[%s154_s3 + $0x18] sm:$0xff] %v58_v26 }
  0x1e   :  { %67 = vsyncpa [#allocation4], 1 }

</bundles_post_ra>
